<compile_context>
chip_gen: v5e
topology: v5e:2x2
jax: 0.10.0
libtpu: 0.0.40
codegen_flags: <defaults>
</compile_context>

<pallas_src>
import functools

import jax
import jax.numpy as jnp
from jax.experimental import pallas as pl
from jax.experimental.pallas import tpu as pltpu


# -----------------------------------------------------------------------------
# Hardware-aware knobs
# -----------------------------------------------------------------------------
@functools.lru_cache(maxsize=None)
def _vmem_capacity_bytes():
    try:
        cap = getattr(pltpu.get_tpu_info(), "vmem_capacity_bytes", None)
        if cap:
            return int(cap)
    except Exception:
        pass
    return 128 * 1024 * 1024


def _vmem_limit_bytes():
    return int(_vmem_capacity_bytes() * 3 // 4)


def _default_lane_cap():
    # Bigger spatial tiles on 128 MiB parts (v5e/v6e); conservative on v7x.
    return 1024 if _vmem_capacity_bytes() <= 64 * 1024 * 1024 else 2048


def _pick_tile(n, cap):
    """Largest lane tile <= cap that divides n and is a multiple of 128."""
    if n <= cap:
        return n
    for m in range(min(cap, n) // 128, 0, -1):
        t = m * 128
        if n % t == 0:
            return t
    return n


def _pick_row_tile(hout, wp, lane_cap):
    """Largest divisor tr of hout with tr*wp lanes <= lane_cap (min 1)."""
    best = 1
    for tr in range(1, hout + 1):
        if hout % tr == 0 and tr * wp <= lane_cap:
            best = tr
    return best


# -----------------------------------------------------------------------------
# Lane-dense matmul + bias kernel:  out = A @ X + bias,  grid over N tiles.
# Used for ConvTranspose2d(k=2, s=2) and the 1x1 OutputBlock conv with batch
# folded into the lane (N) dimension.  A and X are fed in bf16, f32 accum.
# -----------------------------------------------------------------------------
def _matmul_bias_kernel(a_ref, x_ref, b_ref, o_ref):
    o_ref[...] = (
        jnp.dot(a_ref[...], x_ref[...], preferred_element_type=jnp.float32)
        + b_ref[...]
    ).astype(o_ref.dtype)


def matmul_bias_lanes(a, x2d, bias_col, *, out_dtype=jnp.float32, tile_cap=1024):
    # a: (M, K) bf16, x2d: (K, N) bf16, bias_col: (M, 1) f32  ->  (M, N)
    M, K = a.shape
    N = x2d.shape[1]
    Np = ((N + 127) // 128) * 128          # pad N to a lane multiple
    if Np != N:
        x2d = jnp.pad(x2d, ((0, 0), (0, Np - N)))
    tn = _pick_tile(Np, tile_cap)
    out = pl.pallas_call(
        _matmul_bias_kernel,
        out_shape=jax.ShapeDtypeStruct((M, Np), out_dtype),
        grid_spec=pltpu.PrefetchScalarGridSpec(
            num_scalar_prefetch=0,
            grid=(Np // tn,),
            in_specs=[
                pl.BlockSpec((M, K), lambda i: (0, 0)),
                pl.BlockSpec((K, tn), lambda i: (0, i)),
                pl.BlockSpec((M, 1), lambda i: (0, 0)),
            ],
            out_specs=pl.BlockSpec((M, tn), lambda i: (0, i)),
        ),
        compiler_params=pltpu.CompilerParams(
            dimension_semantics=("parallel",),
            vmem_limit_bytes=_vmem_limit_bytes()),
    )(a, x2d, bias_col)
    return out[:, :N] if Np != N else out


# -----------------------------------------------------------------------------
# DyConvBlock kernels.
#
# Geometry (per batch): padded input (Cin, Hp, Wp), Hp = Hout+2, Wp = Wout+2.
# Row tile s covers output rows [s*tr, (s+1)*tr); its input slab is the
# flattened padded rows [s*tr, s*tr+tr+2) plus 2 extra trailing elements, so
# every tap offset off = kh*Wp + kw in [0, 2*Wp+2] gives an in-bounds load of
# T = tr*Wp lanes.  Output lanes with (lane % Wp) >= Wout are garbage pad
# columns: excluded from GroupNorm stats via a mask and sliced off in glue.
# -----------------------------------------------------------------------------
def _dyconv_tile(filt_ref, xslab_ref, Wp, T):
    """9-tap 3x3 conv on one flattened row tile: sum_k F_k @ shift_k(x)."""
    Cout = filt_ref.shape[2]
    acc = jnp.zeros((Cout, T), jnp.float32)
    for kh in range(3):
        for kw in range(3):
            off = kh * Wp + kw
            xs = xslab_ref[0, 0, :, pl.ds(off, T)]          # (Cin, T) bf16
            acc = acc + jnp.dot(filt_ref[0, kh * 3 + kw], xs,
                                preferred_element_type=jnp.float32)
    return acc


def _dyconv_resident_kernel(filt_ref, xslab_ref, mask_ref, gmat_ref, gamma_ref,
                            beta_ref, y_ref, *, Wp, T, count, neg_slope, eps):
    """Resident path: per-batch output stays in VMEM; GN + LeakyReLU at the
    last spatial step (centered two-pass variance)."""
    s = pl.program_id(1)
    n_s = pl.num_programs(1)

    y_ref[0, s] = _dyconv_tile(filt_ref, xslab_ref, Wp, T).astype(y_ref.dtype)

    @pl.when(s == n_s - 1)
    def _():
        y = y_ref[0].astype(jnp.float32)                    # (n_s, Cout, T)
        m = mask_ref[...][None]                             # (1, 1, T)
        ex = jnp.sum(jnp.sum(y * m, axis=2, keepdims=True), axis=0) / count
        gmean = jnp.dot(gmat_ref[...], ex, preferred_element_type=jnp.float32)
        d = y - gmean[None]
        dm = d * m
        var = jnp.sum(jnp.sum(dm * dm, axis=2, keepdims=True), axis=0) / count
        gvar = jnp.dot(gmat_ref[...], var, preferred_element_type=jnp.float32)
        scale = jax.lax.rsqrt(gvar + eps) * gamma_ref[...]
        yn = d * scale[None] + beta_ref[...][None]
        y_ref[0] = jnp.where(yn >= 0, yn, neg_slope * yn).astype(y_ref.dtype)


def _dyconv_stream_kernel(filt_ref, xslab_ref, mask_ref, y_ref, stat_ref,
                          *, Wp, T):
    """Streaming path: conv tiles go to HBM in bf16; per-channel sum and
    sum-of-squares accumulate in a small resident (2, Cout, 1) output."""
    s = pl.program_id(1)

    @pl.when(s == 0)
    def _():
        stat_ref[...] = jnp.zeros_like(stat_ref)

    acc = _dyconv_tile(filt_ref, xslab_ref, Wp, T)
    y_ref[0, 0] = acc.astype(y_ref.dtype)
    am = acc * mask_ref[...]                                # mask pad columns
    stat_ref[0, 0] = stat_ref[0, 0] + jnp.sum(am, axis=1, keepdims=True)
    stat_ref[0, 1] = stat_ref[0, 1] + jnp.sum(acc * am, axis=1, keepdims=True)


def _gn_apply_kernel(y_ref, scale_ref, shift_ref, o_ref, *, neg_slope):
    z = y_ref[0, 0].astype(jnp.float32) * scale_ref[0] + shift_ref[0]
    o_ref[0, 0] = jnp.where(z >= 0, z, neg_slope * z).astype(o_ref.dtype)


def dyconv_block(x_parts, params, *, padding=1, attn_temp=30.0, num_groups=8,
                 lane_cap=None, force_streaming=False):
    """DyConvBlock forward.  x_parts: list of NCHW tensors that are
    (logically) channel-concatenated; kernel=3, stride=1."""
    B, _, H, W = x_parts[0].shape
    lane_cap = lane_cap or _default_lane_cap()

    # ---- glue: AdaptiveAvgPool2d(1) + attention MLP + softmax + filter mix
    # (tiny, lane-width-1 work -> XLA; kernel gets one pre-mixed bf16 bank).
    pooled = jnp.concatenate(
        [jnp.mean(p.astype(jnp.float32), axis=(2, 3)) for p in x_parts], axis=1)
    x_bf = jnp.concatenate([p.astype(jnp.bfloat16) for p in x_parts], axis=1)
    Cin = x_bf.shape[1]

    w = params["weights"]                                  # (K, Cout, Cin, 3, 3)
    K, Cout = w.shape[0], w.shape[1]
    assert Cout % num_groups == 0

    h = jnp.maximum(pooled @ params["attn_w1"].T, 0.0)
    logits = (h @ params["attn_w2"].T
              + params["attn_b2"].reshape(1, K)) * (1.0 / float(attn_temp))
    attn = jax.nn.softmax(logits, axis=1)                  # (B, K)
    fmix = jnp.einsum("bk,kocij->bocij", attn, w)          # (B, Cout, Cin, 3, 3)
    filt = jnp.transpose(fmix, (0, 3, 4, 1, 2)).reshape(B, 9, Cout, Cin)
    filt = filt.astype(jnp.bfloat16)

    # ---- geometry: row-tiled spatial with a 2-row halo per slab
    Hout = H + 2 * padding - 2
    Wout = W + 2 * padding - 2
    Hp, Wp = Hout + 2, Wout + 2
    tr = _pick_row_tile(Hout, Wp, lane_cap)
    n_s = Hout // tr
    T = tr * Wp
    Ls = (tr + 2) * Wp + 2

    xpad = jnp.pad(x_bf, ((0, 0), (0, 0), (padding, padding), (padding, padding)))
    xflat = jnp.pad(xpad.reshape(B, Cin, Hp * Wp), ((0, 0), (0, 0), (0, 2)))
    xslab = jnp.stack([xflat[:, :, s * T: s * T + Ls] for s in range(n_s)],
                      axis=1)                              # (B, n_s, Cin, Ls)

    col = jnp.arange(T, dtype=jnp.int32) % Wp
    mask = (col < Wout).astype(jnp.float32).reshape(1, T)  # valid-column mask

    gamma = params["gamma"].astype(jnp.float32)            # (Cout, 1)
    beta = params["beta"].astype(jnp.float32)
    count = float(Hout * Wout)
    eps, neg_slope = 1e-5, 0.01
    vmem_limit = _vmem_limit_bytes()

    # Residency decision as a function of VMEM capacity (resident fast path
    # only when the whole per-batch output + pipeline buffers comfortably fit).
    resident_bytes = (Cout * n_s * T * 2
                      + 2 * (Cin * Ls * 2 + 9 * Cout * Cin * 2)
                      + Cout * Cout * 4 + 2 * Cout * 4 + T * 4
                      + (2 << 20))
    use_resident = (not force_streaming) and resident_bytes <= vmem_limit // 2

    if use_resident:
        gs = Cout // num_groups
        gid = jnp.arange(Cout) // gs
        gmat = (gid[:, None] == gid[None, :]).astype(jnp.float32) / gs
        kernel = functools.partial(_dyconv_resident_kernel, Wp=Wp, T=T,
                                   count=count, neg_slope=neg_slope, eps=eps)
        y = pl.pallas_call(
            kernel,
            out_shape=jax.ShapeDtypeStruct((B, n_s, Cout, T), jnp.bfloat16),
            grid_spec=pltpu.PrefetchScalarGridSpec(
                num_scalar_prefetch=0,
                grid=(B, n_s),
                in_specs=[
                    pl.BlockSpec((1, 9, Cout, Cin), lambda b, s: (b, 0, 0, 0)),
                    pl.BlockSpec((1, 1, Cin, Ls), lambda b, s: (b, s, 0, 0)),
                    pl.BlockSpec((1, T), lambda b, s: (0, 0)),
                    pl.BlockSpec((Cout, Cout), lambda b, s: (0, 0)),
                    pl.BlockSpec((Cout, 1), lambda b, s: (0, 0)),
                    pl.BlockSpec((Cout, 1), lambda b, s: (0, 0)),
                ],
                out_specs=pl.BlockSpec((1, n_s, Cout, T),
                                       lambda b, s: (b, 0, 0, 0)),
            ),
            compiler_params=pltpu.CompilerParams(
                dimension_semantics=("parallel", "arbitrary"),
                vmem_limit_bytes=vmem_limit),
        )(filt, xslab, mask, gmat, gamma, beta)
    else:
        kernel = functools.partial(_dyconv_stream_kernel, Wp=Wp, T=T)
        y_raw, stats = pl.pallas_call(
            kernel,
            out_shape=(jax.ShapeDtypeStruct((B, n_s, Cout, T), jnp.bfloat16),
                       jax.ShapeDtypeStruct((B, 2, Cout, 1), jnp.float32)),
            grid_spec=pltpu.PrefetchScalarGridSpec(
                num_scalar_prefetch=0,
                grid=(B, n_s),
                in_specs=[
                    pl.BlockSpec((1, 9, Cout, Cin), lambda b, s: (b, 0, 0, 0)),
                    pl.BlockSpec((1, 1, Cin, Ls), lambda b, s: (b, s, 0, 0)),
                    pl.BlockSpec((1, T), lambda b, s: (0, 0)),
                ],
                out_specs=(
                    pl.BlockSpec((1, 1, Cout, T), lambda b, s: (b, s, 0, 0)),
                    pl.BlockSpec((1, 2, Cout, 1), lambda b, s: (b, 0, 0, 0)),
                ),
            ),
            compiler_params=pltpu.CompilerParams(
                dimension_semantics=("parallel", "arbitrary"),
                vmem_limit_bytes=vmem_limit),
        )(filt, xslab, mask)

        # glue: per-group stats -> per-channel scale/shift.
        # TODO(synk): E[x^2]-E[x]^2 has cancellation risk for very large means;
        # the resident path uses a centered two-pass variance instead.
        mean_c = stats[:, 0, :, 0] / count                  # (B, Cout)
        ex2_c = stats[:, 1, :, 0] / count
        gs = Cout // num_groups
        gmean = jnp.mean(mean_c.reshape(B, num_groups, gs), axis=2)
        gex2 = jnp.mean(ex2_c.reshape(B, num_groups, gs), axis=2)
        gvar = jnp.maximum(gex2 - gmean * gmean, 0.0)
        rstd = jax.lax.rsqrt(gvar + eps)
        gmean_c = jnp.repeat(gmean, gs, axis=1)             # (B, Cout)
        rstd_c = jnp.repeat(rstd, gs, axis=1)
        g_row = gamma.reshape(1, Cout)
        scale = (rstd_c * g_row)[..., None]                 # (B, Cout, 1)
        shift = (beta.reshape(1, Cout) - gmean_c * rstd_c * g_row)[..., None]

        y = pl.pallas_call(
            functools.partial(_gn_apply_kernel, neg_slope=neg_slope),
            out_shape=jax.ShapeDtypeStruct((B, n_s, Cout, T), jnp.bfloat16),
            grid_spec=pltpu.PrefetchScalarGridSpec(
                num_scalar_prefetch=0,
                grid=(B, n_s),
                in_specs=[
                    pl.BlockSpec((1, 1, Cout, T), lambda b, s: (b, s, 0, 0)),
                    pl.BlockSpec((1, Cout, 1), lambda b, s: (b, 0, 0)),
                    pl.BlockSpec((1, Cout, 1), lambda b, s: (b, 0, 0)),
                ],
                out_specs=pl.BlockSpec((1, 1, Cout, T),
                                       lambda b, s: (b, s, 0, 0)),
            ),
            compiler_params=pltpu.CompilerParams(
                dimension_semantics=("parallel", "parallel"),
                vmem_limit_bytes=vmem_limit),
        )(y_raw, scale, shift)

    # glue: (B, n_s, Cout, T) -> (B, Cout, Hout, Wout), dropping pad columns.
    y = y.reshape(B, n_s, Cout, tr, Wp)
    y = jnp.transpose(y, (0, 2, 1, 3, 4)).reshape(B, Cout, Hout, Wp)
    return y[..., :Wout]


# -----------------------------------------------------------------------------
# ConvTranspose2d(kernel=2, stride=2): lane-dense bf16 matmul, interleave in
# glue (bf16).
# -----------------------------------------------------------------------------
def conv_transpose_2x2(x, weight, bias):
    # x: (B, Cin, H, W); weight (PyTorch layout): (Cin, Cout, 2, 2); bias: (Cout,)
    B, Cin, H, W = x.shape
    Cout = weight.shape[1]
    a = jnp.transpose(weight, (1, 2, 3, 0)).reshape(Cout * 4, Cin)
    a = a.astype(jnp.bfloat16)
    bcol = jnp.repeat(bias, 4).reshape(Cout * 4, 1).astype(jnp.float32)
    x2d = jnp.transpose(x, (1, 0, 2, 3)).reshape(Cin, B * H * W)
    x2d = x2d.astype(jnp.bfloat16)
    y = matmul_bias_lanes(a, x2d, bcol, out_dtype=jnp.bfloat16)
    y = y.reshape(Cout, 2, 2, B, H, W)
    y = jnp.transpose(y, (3, 0, 4, 1, 5, 2)).reshape(B, Cout, 2 * H, 2 * W)
    return y


# -----------------------------------------------------------------------------
# OutputBlock: assumed 1x1 Conv2d(out_channels -> num_class) with bias.
# -----------------------------------------------------------------------------
def conv1x1(x, weight, bias):
    # weight: (Cout, Cin, 1, 1)
    B, Cin, H, W = x.shape
    Cout = weight.shape[0]
    x2d = jnp.transpose(x, (1, 0, 2, 3)).reshape(Cin, B * H * W)
    y = matmul_bias_lanes(weight.reshape(Cout, Cin).astype(jnp.bfloat16),
                          x2d.astype(jnp.bfloat16),
                          bias.reshape(Cout, 1).astype(jnp.float32),
                          out_dtype=jnp.float32)
    return y.reshape(Cout, B, H, W).transpose(1, 0, 2, 3)


def center_crop(t, target):
    h, w = t.shape[-2], t.shape[-1]
    dh = (h - target) // 2
    dw = (w - target) // 2
    return t[..., dh:dh + target, dw:dw + target]


# -----------------------------------------------------------------------------
# Decoder forward (upsample=False branch: ConvTranspose2d + MultiCNNBlock stack)
# -----------------------------------------------------------------------------
def decoder_forward(x, routes_connection, params, padding):
    routes = list(routes_connection)
    routes.pop(-1)
    for layer in params["layers"]:
        if layer["type"] == "convT":
            x = conv_transpose_2x2(x, layer["weight"], layer["bias"])
        elif layer["type"] == "multicnn":
            skip = routes.pop(-1)
            if padding == 0:
                skip = center_crop(skip, x.shape[-1])
            for idx, dy in enumerate(layer["convs"]):
                parts = [x, skip] if idx == 0 else [x]
                x = dyconv_block(parts, dy, padding=padding)
        elif layer["type"] == "output":
            x = conv1x1(x, layer["weight"], layer["bias"])
        else:
            raise ValueError(layer["type"])
    return x


# -----------------------------------------------------------------------------
# Deterministic parameter init (shapes dictated by the module __init__).
# -----------------------------------------------------------------------------
def _normal(key, shape, scale=1.0):
    return scale * jax.random.normal(key, shape, dtype=jnp.float32)


def init_dyconv_params(key, cin, cout, num_dy_conv=4):
    hidden = num_dy_conv if cin == 3 else int(cin * 0.25) + 1
    k = jax.random.split(key, 4)
    return dict(
        attn_w1=_normal(k[0], (hidden, cin), 0.3),
        attn_w2=_normal(k[1], (num_dy_conv, hidden), 0.3),
        attn_b2=_normal(k[2], (num_dy_conv, 1), 0.1),
        weights=_normal(k[3], (num_dy_conv, cout, cin, 3, 3), 1.0),
        gamma=jnp.ones((cout, 1), jnp.float32),
        beta=jnp.zeros((cout, 1), jnp.float32),
    )


def init_decoder_params(key, in_channels, out_channels, num_class, size,
                        num_dy_conv=4):
    keys = iter(jax.random.split(key, 4 * size + 2))
    layers = []
    for _ in range(size):
        layers.append(dict(
            type="convT",
            weight=_normal(next(keys), (in_channels, out_channels, 2, 2), 0.2),
            bias=_normal(next(keys), (out_channels,), 0.1),
        ))
        layers.append(dict(
            type="multicnn",
            convs=[
                init_dyconv_params(next(keys), 2 * in_channels, out_channels,
                                   num_dy_conv),
                init_dyconv_params(next(keys), out_channels, out_channels,
                                   num_dy_conv),
            ],
        ))
    layers.append(dict(
        type="output",
        weight=_normal(next(keys), (num_class, out_channels, 1, 1), 0.2),
        bias=_normal(next(keys), (num_class,), 0.1),
    ))
    return dict(layers=layers)


if __name__ == "__main__":
    key = jax.random.PRNGKey(0)
    kx, kr1, kr2, kd, kp, kt = jax.random.split(key, 6)

    # Small shapes consistent with the module: in_channels == out_channels so
    # that the repeated (ConvTranspose2d + MultiCNNBlock(2C -> C)) chain is
    # shape-consistent. padding=1 (the "same"-conv path; no center_crop).
    B, C, H, W = 2, 8, 8, 8
    num_class = 3
    size = 2
    padding = 1

    x = jax.random.normal(kx, (B, C, H, W), jnp.float32)
    # routes_connection: last element is popped unused; then one skip per block.
    routes_connection = [
        jax.random.normal(kr1, (B, C, 4 * H, 4 * W), jnp.float32),  # 2nd block
        jax.random.normal(kr2, (B, C, 2 * H, 2 * W), jnp.float32),  # 1st block
        jax.random.normal(kd, (B, C, H, W), jnp.float32),           # popped
    ]

    params = init_decoder_params(kp, C, C, num_class, size)

    out = decoder_forward(x, routes_connection, params, padding)
    out = jax.block_until_ready(out)
    assert out.shape == (B, num_class, 4 * H, 4 * W), out.shape
    assert bool(jnp.all(jnp.isfinite(out)))

    # Cross-check: the streaming (two-pass GroupNorm) path vs the resident
    # path on a multi-tile spatial grid (lane_cap=128 forces n_s > 1).
    xt = jax.random.normal(kt, (B, 16, 16, 16), jnp.float32)
    dyp = init_dyconv_params(jax.random.PRNGKey(1), 16, 16)
    y_res = dyconv_block([xt], dyp, padding=1, lane_cap=128,
                         force_streaming=False)
    y_str = dyconv_block([xt], dyp, padding=1, lane_cap=128,
                         force_streaming=True)
    y_res = jax.block_until_ready(y_res)
    y_str = jax.block_until_ready(y_str)
    assert y_res.shape == y_str.shape == (B, 16, 16, 16)
    diff = float(jnp.max(jnp.abs(y_res.astype(jnp.float32)
                                 - y_str.astype(jnp.float32))))
    assert diff < 0.2, diff

    print("KERNEL_OK")
</pallas_src>

<mosaic_0001>
module attributes {stable_mosaic.version = 11 : i64} {
  func.func @_matmul_bias_kernel(%arg0: i32, %arg1: memref<32x8xbf16, #tpu.memory_space<vmem>>, %arg2: memref<8x128xbf16, #tpu.memory_space<vmem>>, %arg3: memref<32x1xf32, #tpu.memory_space<vmem>>, %arg4: memref<32x128xbf16, #tpu.memory_space<vmem>>) attributes {dimension_semantics = [#tpu.dimension_semantics<parallel>], iteration_bounds = array<i64: 1>, scalar_prefetch = 0 : i64, scratch_operands = 0 : i64, tpu.core_type = #tpu.core_type<tc>, window_params = [{pipeline_mode = #tpu.pipeline_mode<synchronous>, transform_indices = @transform_0, window_bounds = array<i64: 32, 8>}, {transform_indices = @transform_1, window_bounds = array<i64: 8, 128>}, {pipeline_mode = #tpu.pipeline_mode<synchronous>, transform_indices = @transform_2, window_bounds = array<i64: 32, 1>}, {transform_indices = @transform_3, window_bounds = array<i64: 32, 128>}]} {
    %c0 = arith.constant 0 : index
    %c0_0 = arith.constant 0 : index
    %0 = vector.load %arg1[%c0, %c0_0] : memref<32x8xbf16, #tpu.memory_space<vmem>>, vector<32x8xbf16>
    %c0_1 = arith.constant 0 : index
    %c0_2 = arith.constant 0 : index
    %1 = vector.load %arg2[%c0_1, %c0_2] : memref<8x128xbf16, #tpu.memory_space<vmem>>, vector<8x128xbf16>
    %cst = arith.constant dense<0.000000e+00> : vector<32x128xf32>
    %2 = tpu.matmul %0, %1, %cst {dimension_numbers = #tpu.dot_dimension_numbers<[1], [0], [0], [1], [0, 0, 1, 1], [], []>} : vector<32x8xbf16>, vector<8x128xbf16>, vector<32x128xf32> -> vector<32x128xf32>
    %c0_3 = arith.constant 0 : index
    %c0_4 = arith.constant 0 : index
    %3 = vector.load %arg3[%c0_3, %c0_4] : memref<32x1xf32, #tpu.memory_space<vmem>>, vector<32x1xf32>
    %4 = vector.broadcast %3 : vector<32x1xf32> to vector<32x128xf32>
    %5 = arith.addf %2, %4 : vector<32x128xf32>
    %6 = arith.truncf %5 : vector<32x128xf32> to vector<32x128xbf16>
    %c0_5 = arith.constant 0 : index
    %c0_6 = arith.constant 0 : index
    %7 = vector.load %arg4[%c0_5, %c0_6] : memref<32x128xbf16, #tpu.memory_space<vmem>>, vector<32x128xbf16>
    tpu.vector_store %arg4[%c0_5, %c0_6], %6 {strides = array<i32>} : memref<32x128xbf16, #tpu.memory_space<vmem>>, vector<32x128xbf16>,
    return
  }
  func.func @transform_0(%arg0: i32) -> (i32, i32) {
    %c0_i32 = arith.constant 0 : i32
    %c0_i32_0 = arith.constant 0 : i32
    %c0_i32_1 = arith.constant 0 : i32
    return %c0_i32, %c0_i32_0 : i32, i32
  }
  func.func @transform_1(%arg0: i32) -> (i32, i32) {
    %c0_i32 = arith.constant 0 : i32
    %c0_i32_0 = arith.constant 0 : i32
    return %c0_i32, %arg0 : i32, i32
  }
  func.func @transform_2(%arg0: i32) -> (i32, i32) {
    %c0_i32 = arith.constant 0 : i32
    %c0_i32_0 = arith.constant 0 : i32
    %c0_i32_1 = arith.constant 0 : i32
    return %c0_i32, %c0_i32_0 : i32, i32
  }
  func.func @transform_3(%arg0: i32) -> (i32, i32) {
    %c0_i32 = arith.constant 0 : i32
    %c0_i32_0 = arith.constant 0 : i32
    return %c0_i32, %arg0 : i32, i32
  }
}

</mosaic_0001>

<bundles_post_ra>
// kernel: tpu_custom_call.1
= control target key start
LH: loop header
LB: loop body
LE: loop exit
PB: predicated region body
PF: predicated region fallthrough
CT: control target
= control target key end

     0   :  { %vm62_vm0 = vcmask 1043456   ;;  %vm55_vm1 = vcmask 64512   ;;  %s215_s0 = inlined_call_operand.vmem [shape: bf16[32,8], index: 0, kind: input, shape index: {}]   ;;  %s216_s1 = inlined_call_operand.vmem [shape: bf16[8,128], index: 1, kind: input, shape index: {}]   ;;  %s217_s2 = inlined_call_operand.vmem [shape: f32[32,1], index: 2, kind: input, shape index: {}]   ;;  %s218_s3 = inlined_call_operand.hbm [shape: bf16[32,128], index: 3, kind: output, shape index: {}]  }
   0x1   :  { %v20_v0 = vld [vmem:[%s216_s1] sm:$0xf]  ;;  %v122_v3 = vld [vmem:[%s215_s0 + $0x8] sm:$0xff]  ;;  %v23_v4 = vld [vmem:[%s217_s2 + $0x10] sm:$0xff] }
   0x2   :  { %v121_v1 = vld [vmem:[%s215_s0] sm:$0xff]  ;;  %v64_v2 = vsel %vm62_vm0, %v20_v0, 0 }
   0x3   :  { %v21_v5 = vld [vmem:[%s217_s2] sm:$0xff]  ;;  %73 = vmatpush.bf16.msra.mxu0 %v64_v2  ;;  %134 = vmatpush.bf16.msra.mxu1 %v64_v2 }
   0x4   :  { %8 = vsyncpa [#allocation3], 0  ;;  %v167_v6 = vmov 0   ;;  %v24_v7 = vld [vmem:[%s217_s2 + $0x18] sm:$0xff]  ;;  %v22_v8 = vld [vmem:[%s217_s2 + $0x8] sm:$0xff]  ;;  %s168_s24 = smov [#allocation2]  }
   0x5   :  { %140 = vset.pattern.permute.xlu1 %v167_v6  ;;  %139 = vset.pattern.permute.xlu0 %v167_v6  ;;  %s97_s25 = sshll.u32 %s168_s24, 4  ;;  %s99_s28 = sshll.u32 %s218_s3, 4  ;;  %s98_s25 = int_to_ptr.vmem [resolvable:$true] %s97_s25  ;;  %s100_s28 = int_to_ptr.hbm [resolvable:$true] %s99_s28 }
   0x6   :  { %37 = vperm.xlu1 %140, %v23_v4   ;;  %27 = vperm.xlu0 %139, %v21_v5   ;;  %s169_s2 = smov 64   ;;  %s170_s29 = smov 4  }
   0x7   :  { %119 = vmatmul.msk.bf16.vlgmr.msra.gmra.mxu0 %vm55_vm1, %v121_v1  ;;  %120 = vmatmul.msk.bf16.vlgmr.msra.gmra.mxu1 %vm55_vm1, %v122_v3 }
   0xe   :  { %42 = vperm.xlu1 %140, %v24_v7   ;;  %32 = vperm.xlu0 %139, %v22_v8  }
  0x78   :  { %v38_v9 = vpop.permute.xlu1 %37  ;;  %v28_v10 = vpop.permute.xlu0 %27 }
  0x80   :  { %v43_v13 = vpop.permute.xlu1 %42  ;;  %v33_v14 = vpop.permute.xlu0 %32 }
  0x84   :  { %v75_v11 = vpop.f32.mrf.mxu0  ;;  %v80_v12 = vpop.f32.mrf.mxu1 }
  0x85   :  { %v76_v17 = vadd.f32 %v75_v11, %v28_v10  ;;  %v81_v18 = vadd.f32 %v80_v12, %v38_v9 }
  0x8c   :  { %v77_v15 = vpop.f32.mrf.mxu0  ;;  %v82_v16 = vpop.f32.mrf.mxu1 }
  0x8d   :  { %v78_v19 = vadd.f32 %v77_v15, %v33_v14  ;;  %v83_v20 = vadd.f32 %v82_v16, %v43_v13 }
  0x8f   :  { %v126_v21 = vpack.c.bf16 %v78_v19, %v76_v17  ;;  %v131_v22 = vpack.c.bf16 %v83_v20, %v81_v18 }
  0x91   :  { %127 = vst [vmem:[#allocation2] sm:$0xff] %v126_v21  }
  0x92   :  { %133 = vst [vmem:[#allocation2 + $0x8] sm:$0xff] %v131_v22  }
  0x93   :  { %105 = dma.vmem_to_hbm [thread:$0]  %s98_s25, 256, %s100_s28, [#allocation3], %s169_s2, %s169_s2, %s170_s29  }
  0x94   :  { %165 = dma.done.wait [#allocation3], 256  }
  0x95   :  { %166 = vsyncadd [#allocation3], 4294967040 }
  0x96   :  { %110 = vsyncpa [#allocation3], 1 }

</bundles_post_ra>
